<compile_context>
chip_gen: v7x
topology: tpu7x:2x2x1
jax: 0.10.0
libtpu: 0.0.40
codegen_flags: <defaults>
</compile_context>

<pallas_src>
import functools

import jax
import jax.numpy as jnp
from jax import lax
from jax.experimental import pallas as pl
from jax.experimental.pallas import tpu as pltpu


def _im2col_rows(a, wp):
    """3x3 im2col in flat padded-W layout.

    a: (C, H*wp) activation, row-major over (H, wp) with wp = W + 2 (one zero
       column on each side of every row).  Returns (9*C, H*wp); row block
       t = kh*3 + kw holds `a` shifted by (kh-1, kw-1).  The H halo is realised
       by zero-extending the flat axis, the W halo is already present in `a`.
    """
    c, l = a.shape
    halo = wp + 1                                    # max |flat shift|
    z = jnp.zeros((c, halo), a.dtype)
    a_ext = jnp.concatenate([z, a, z], axis=1)       # (c, l + 2*halo)
    pieces = []
    for dh in (-1, 0, 1):
        for dw in (-1, 0, 1):
            s = halo + dh * wp + dw
            pieces.append(a_ext[:, s:s + l])
    return jnp.concatenate(pieces, axis=0)           # (9*c, l)


def _bottleneck_kernel(x_ref, w1_ref, w2_ref, wsc_ref, b1f_ref, alpha_ref,
                       b3_ref, bsc_ref, mask_ref, o_ref, *, wp):
    x_bf = x_ref[0]                                  # (Cp, L) bf16
    x_f32 = x_bf.astype(jnp.float32)

    # conv1 (BN1 scale and BN2 scale folded into w1) as ONE matmul.
    p1 = _im2col_rows(x_f32, wp).astype(jnp.bfloat16)            # (9*Cp, L)
    h = jnp.dot(w1_ref[...], p1, preferred_element_type=jnp.float32)
    h = h + b1f_ref[...]                             # exact BN1-bias field + BN2 bias

    # PReLU (f32), then zero the W-halo columns so conv2 sees true zero padding.
    h = jnp.where(h >= 0.0, h, alpha_ref[...] * h)
    h = h * mask_ref[...]

    # conv2 (BN3 scale folded into w2) as ONE matmul.
    p2 = _im2col_rows(h, wp).astype(jnp.bfloat16)                # (9*Cout, L)
    res = jnp.dot(w2_ref[...], p2, preferred_element_type=jnp.float32)
    res = res + b3_ref[...]

    # shortcut: 1x1 conv (its BN scale folded) + bias.
    sc = jnp.dot(wsc_ref[...], x_bf, preferred_element_type=jnp.float32)
    sc = sc + bsc_ref[...]

    o_ref[0] = res + sc                              # (Cout, L) f32, lane-dense store


def _full_spec(a):
    nd = a.ndim
    return pl.BlockSpec(a.shape, lambda n, _nd=nd: (0,) * _nd)


def bottleneck_ir_pallas(x_nchw, p):
    """x_nchw: (N, Cin, H, W) f32; p: module parameters (see make_params)."""
    N, Cin, H, W = x_nchw.shape
    Cout = p["w2"].shape[-1]
    Wp = W + 2
    L = H * Wp
    Cp = -(-Cin // 8) * 8                 # pad input channels to a full sublane tile

    f32, bf16 = jnp.float32, jnp.bfloat16

    # ---- host-side weight folding (exact) ----
    w1f = p["w1"] * p["s1"][None, None, :, None] * p["s2"][None, None, None, :]
    w1m = jnp.transpose(w1f, (3, 0, 1, 2)).reshape(Cout, 9, Cin)
    w1m = jnp.pad(w1m, ((0, 0), (0, 0), (0, Cp - Cin))).reshape(Cout, 9 * Cp)

    w2f = p["w2"] * p["s3"][None, None, None, :]
    w2m = jnp.transpose(w2f, (3, 0, 1, 2)).reshape(Cout, 9 * Cout)

    wscm = (p["wsc"][0, 0] * p["ssc"][None, :]).T                # (Cout, Cin)
    wscm = jnp.pad(wscm, ((0, 0), (0, Cp - Cin)))

    # BN1's bias cannot be folded into w1 (border pixels see padded zeros, not b1);
    # precompute its exact contribution conv_w1(pad0(b1)) * s2 + b2 as a bias field.
    b1_img = jnp.broadcast_to(p["b1"][None, :, None, None], (1, Cin, H, W))
    b1_field = lax.conv_general_dilated(
        b1_img, p["w1"], (1, 1), ((1, 1), (1, 1)),
        dimension_numbers=("NCHW", "HWIO", "NCHW"))[0]           # (Cout, H, W)
    b1_field = b1_field * p["s2"][:, None, None] + p["b2"][:, None, None]
    b1_field = jnp.pad(b1_field, ((0, 0), (0, 0), (1, 1))).reshape(Cout, L)

    alpha_c = p["alpha"][:, None].astype(f32)
    b3_c = p["b3"][:, None].astype(f32)
    bsc_c = p["bsc"][:, None].astype(f32)
    col_mask = jnp.pad(jnp.ones((1, H, W), f32),
                       ((0, 0), (0, 0), (1, 1))).reshape(1, L)

    # input: channel-pad to Cp, one-column W halo, flatten spatial, bf16 for the MXU.
    xk = jnp.pad(x_nchw, ((0, 0), (0, Cp - Cin), (0, 0), (1, 1)))
    xk = xk.reshape(N, Cp, L).astype(bf16)

    operands = (xk, w1m.astype(bf16), w2m.astype(bf16), wscm.astype(bf16),
                b1_field.astype(f32), alpha_c, b3_c, bsc_c, col_mask)
    in_specs = [pl.BlockSpec((1, Cp, L), lambda n: (n, 0, 0))]
    in_specs += [_full_spec(a) for a in operands[1:]]

    out = pl.pallas_call(
        functools.partial(_bottleneck_kernel, wp=Wp),
        out_shape=jax.ShapeDtypeStruct((N, Cout, L), f32),
        grid_spec=pltpu.PrefetchScalarGridSpec(
            num_scalar_prefetch=0,
            grid=(N,),
            in_specs=in_specs,
            out_specs=pl.BlockSpec((1, Cout, L), lambda n: (n, 0, 0))),
        compiler_params=pltpu.CompilerParams(
            dimension_semantics=("parallel",)),
    )(*operands)

    # drop the W-halo columns; no transpose needed (layout is already N, C, (H*W)).
    return out.reshape(N, Cout, H, Wp)[:, :, :, 1:W + 1]


# ---------------- deterministic synthetic parameters ----------------

def _fold_bn(gamma, beta, mean, var, eps=1e-5):
    scale = gamma / jnp.sqrt(var + eps)
    return scale, beta - mean * scale


def make_params(key, cin, cout):
    ks = jax.random.split(key, 20)

    def bn_fold(k0, k1, k2, k3, c):
        gamma = 1.0 + 0.1 * jax.random.normal(k0, (c,), jnp.float32)
        beta = 0.1 * jax.random.normal(k1, (c,), jnp.float32)
        mean = 0.1 * jax.random.normal(k2, (c,), jnp.float32)
        var = jax.random.uniform(k3, (c,), jnp.float32, 0.5, 1.5)
        return _fold_bn(gamma, beta, mean, var)

    s1, b1 = bn_fold(ks[0], ks[1], ks[2], ks[3], cin)
    s2, b2 = bn_fold(ks[4], ks[5], ks[6], ks[7], cout)
    s3, b3 = bn_fold(ks[8], ks[9], ks[10], ks[11], cout)
    ssc, bsc = bn_fold(ks[12], ks[13], ks[14], ks[15], cout)

    return dict(
        s1=s1, b1=b1, s2=s2, b2=b2, s3=s3, b3=b3, ssc=ssc, bsc=bsc,
        alpha=0.25 + 0.05 * jax.random.normal(ks[19], (cout,), jnp.float32),
        w1=0.1 * jax.random.normal(ks[16], (3, 3, cin, cout), jnp.float32),
        w2=0.1 * jax.random.normal(ks[17], (3, 3, cout, cout), jnp.float32),
        wsc=0.1 * jax.random.normal(ks[18], (1, 1, cin, cout), jnp.float32),
    )


# ---------------- pure-JAX reference (same math, NCHW, all f32) ----------------

def reference(x, p):
    def bn(t, s, b):
        return t * s[None, :, None, None] + b[None, :, None, None]

    def conv(t, w, pad):
        return lax.conv_general_dilated(
            t, w, (1, 1), ((pad, pad), (pad, pad)),
            dimension_numbers=("NCHW", "HWIO", "NCHW"))

    h = bn(x, p["s1"], p["b1"])
    h = conv(h, p["w1"], 1)
    h = bn(h, p["s2"], p["b2"])
    h = jnp.where(h >= 0, h, p["alpha"][None, :, None, None] * h)
    h = conv(h, p["w2"], 1)
    res = bn(h, p["s3"], p["b3"])
    sc = bn(conv(x, p["wsc"], 0), p["ssc"], p["bsc"])
    return res + sc


if __name__ == "__main__":
    N, Cin, Cout, H, W = 2, 4, 8, 16, 16
    key = jax.random.PRNGKey(0)
    kx, kp = jax.random.split(key)
    x = jax.random.normal(kx, (N, Cin, H, W), jnp.float32)
    params = make_params(kp, Cin, Cout)

    out = jax.block_until_ready(jax.jit(bottleneck_ir_pallas)(x, params))
    ref = jax.block_until_ready(reference(x, params))

    assert out.shape == (N, Cout, H, W)
    err = jnp.abs(out - ref)
    # Tolerance sized for bf16 MXU operands (rel ~2^-8 through two 72-deep
    # contractions); the all-f32 variant of this kernel matches to ~1e-5.
    bound = 2e-2 + 2e-2 * jnp.abs(ref)
    ok = bool(jnp.all(jnp.isfinite(out))) and bool(jnp.all(err <= bound))
    if not ok:
        raise SystemExit(
            f"mismatch vs reference: max abs err = {float(jnp.max(err))}")
    print("KERNEL_OK")
</pallas_src>

<mosaic_0001>
module attributes {stable_mosaic.version = 11 : i64} {
  func.func @_bottleneck_kernel(%arg0: i32, %arg1: memref<1x8x288xbf16, #tpu.memory_space<vmem>>, %arg2: memref<8x72xbf16, #tpu.memory_space<vmem>>, %arg3: memref<8x72xbf16, #tpu.memory_space<vmem>>, %arg4: memref<8x8xbf16, #tpu.memory_space<vmem>>, %arg5: memref<8x288xf32, #tpu.memory_space<vmem>>, %arg6: memref<8x1xf32, #tpu.memory_space<vmem>>, %arg7: memref<8x1xf32, #tpu.memory_space<vmem>>, %arg8: memref<8x1xf32, #tpu.memory_space<vmem>>, %arg9: memref<1x288xf32, #tpu.memory_space<vmem>>, %arg10: memref<1x8x288xf32, #tpu.memory_space<vmem>>) attributes {dimension_semantics = [#tpu.dimension_semantics<parallel>], iteration_bounds = array<i64: 2>, scalar_prefetch = 0 : i64, scratch_operands = 0 : i64, tpu.core_type = #tpu.core_type<tc>, window_params = [{transform_indices = @transform_0, window_bounds = array<i64: 1, 8, 288>}, {pipeline_mode = #tpu.pipeline_mode<synchronous>, transform_indices = @transform_1, window_bounds = array<i64: 8, 72>}, {pipeline_mode = #tpu.pipeline_mode<synchronous>, transform_indices = @transform_2, window_bounds = array<i64: 8, 72>}, {pipeline_mode = #tpu.pipeline_mode<synchronous>, transform_indices = @transform_3, window_bounds = array<i64: 8, 8>}, {pipeline_mode = #tpu.pipeline_mode<synchronous>, transform_indices = @transform_4, window_bounds = array<i64: 8, 288>}, {pipeline_mode = #tpu.pipeline_mode<synchronous>, transform_indices = @transform_5, window_bounds = array<i64: 8, 1>}, {pipeline_mode = #tpu.pipeline_mode<synchronous>, transform_indices = @transform_6, window_bounds = array<i64: 8, 1>}, {pipeline_mode = #tpu.pipeline_mode<synchronous>, transform_indices = @transform_7, window_bounds = array<i64: 8, 1>}, {pipeline_mode = #tpu.pipeline_mode<synchronous>, transform_indices = @transform_8, window_bounds = array<i64: 1, 288>}, {transform_indices = @transform_9, window_bounds = array<i64: 1, 8, 288>}]} {
    %c0 = arith.constant 0 : index
    %c0_0 = arith.constant 0 : index
    %c0_1 = arith.constant 0 : index
    %0 = vector.load %arg1[%c0, %c0_0, %c0_1] : memref<1x8x288xbf16, #tpu.memory_space<vmem>>, vector<1x8x288xbf16>
    %1 = vector.shape_cast %0 : vector<1x8x288xbf16> to vector<8x288xbf16>
    %2 = arith.extf %1 : vector<8x288xbf16> to vector<8x288xf32>
    %cst = arith.constant 0.000000e+00 : f32
    %3 = vector.broadcast %cst : f32 to vector<8x19xf32>
    %4 = tpu.concatenate %3, %2, %3 in 1 : vector<8x19xf32>, vector<8x288xf32>, vector<8x19xf32> -> vector<8x326xf32>
    %5 = vector.extract_strided_slice %4 {offsets = [0, 0], sizes = [8, 288], strides = [1, 1]} : vector<8x326xf32> to vector<8x288xf32>
    %6 = vector.extract_strided_slice %4 {offsets = [0, 1], sizes = [8, 288], strides = [1, 1]} : vector<8x326xf32> to vector<8x288xf32>
    %7 = vector.extract_strided_slice %4 {offsets = [0, 2], sizes = [8, 288], strides = [1, 1]} : vector<8x326xf32> to vector<8x288xf32>
    %8 = vector.extract_strided_slice %4 {offsets = [0, 18], sizes = [8, 288], strides = [1, 1]} : vector<8x326xf32> to vector<8x288xf32>
    %9 = vector.extract_strided_slice %4 {offsets = [0, 19], sizes = [8, 288], strides = [1, 1]} : vector<8x326xf32> to vector<8x288xf32>
    %10 = vector.extract_strided_slice %4 {offsets = [0, 20], sizes = [8, 288], strides = [1, 1]} : vector<8x326xf32> to vector<8x288xf32>
    %11 = vector.extract_strided_slice %4 {offsets = [0, 36], sizes = [8, 288], strides = [1, 1]} : vector<8x326xf32> to vector<8x288xf32>
    %12 = vector.extract_strided_slice %4 {offsets = [0, 37], sizes = [8, 288], strides = [1, 1]} : vector<8x326xf32> to vector<8x288xf32>
    %13 = vector.extract_strided_slice %4 {offsets = [0, 38], sizes = [8, 288], strides = [1, 1]} : vector<8x326xf32> to vector<8x288xf32>
    %14 = tpu.concatenate %5, %6, %7, %8, %9, %10, %11, %12, %13 in 0 : vector<8x288xf32>, vector<8x288xf32>, vector<8x288xf32>, vector<8x288xf32>, vector<8x288xf32>, vector<8x288xf32>, vector<8x288xf32>, vector<8x288xf32>, vector<8x288xf32> -> vector<72x288xf32>
    %15 = arith.truncf %14 : vector<72x288xf32> to vector<72x288xbf16>
    %c0_2 = arith.constant 0 : index
    %c0_3 = arith.constant 0 : index
    %16 = vector.load %arg2[%c0_2, %c0_3] : memref<8x72xbf16, #tpu.memory_space<vmem>>, vector<8x72xbf16>
    %cst_4 = arith.constant dense<0.000000e+00> : vector<8x288xf32>
    %17 = tpu.matmul %16, %15, %cst_4 {dimension_numbers = #tpu.dot_dimension_numbers<[1], [0], [0], [1], [0, 0, 1, 1], [], []>} : vector<8x72xbf16>, vector<72x288xbf16>, vector<8x288xf32> -> vector<8x288xf32>
    %c0_5 = arith.constant 0 : index
    %c0_6 = arith.constant 0 : index
    %18 = vector.load %arg5[%c0_5, %c0_6] : memref<8x288xf32, #tpu.memory_space<vmem>>, vector<8x288xf32>
    %19 = arith.addf %17, %18 : vector<8x288xf32>
    %cst_7 = arith.constant 0.000000e+00 : f32
    %20 = vector.broadcast %cst_7 : f32 to vector<8x288xf32>
    %21 = arith.cmpf oge, %19, %20 : vector<8x288xf32>
    %c0_8 = arith.constant 0 : index
    %c0_9 = arith.constant 0 : index
    %22 = vector.load %arg6[%c0_8, %c0_9] : memref<8x1xf32, #tpu.memory_space<vmem>>, vector<8x1xf32>
    %23 = vector.broadcast %22 : vector<8x1xf32> to vector<8x288xf32>
    %24 = arith.mulf %23, %19 : vector<8x288xf32>
    %25 = arith.select %21, %19, %24 : vector<8x288xi1>, vector<8x288xf32>
    %c0_10 = arith.constant 0 : index
    %c0_11 = arith.constant 0 : index
    %26 = vector.load %arg9[%c0_10, %c0_11] : memref<1x288xf32, #tpu.memory_space<vmem>>, vector<1x288xf32>
    %27 = vector.broadcast %26 : vector<1x288xf32> to vector<8x288xf32>
    %28 = arith.mulf %25, %27 : vector<8x288xf32>
    %cst_12 = arith.constant 0.000000e+00 : f32
    %29 = vector.broadcast %cst_12 : f32 to vector<8x19xf32>
    %30 = tpu.concatenate %29, %28, %29 in 1 : vector<8x19xf32>, vector<8x288xf32>, vector<8x19xf32> -> vector<8x326xf32>
    %31 = vector.extract_strided_slice %30 {offsets = [0, 0], sizes = [8, 288], strides = [1, 1]} : vector<8x326xf32> to vector<8x288xf32>
    %32 = vector.extract_strided_slice %30 {offsets = [0, 1], sizes = [8, 288], strides = [1, 1]} : vector<8x326xf32> to vector<8x288xf32>
    %33 = vector.extract_strided_slice %30 {offsets = [0, 2], sizes = [8, 288], strides = [1, 1]} : vector<8x326xf32> to vector<8x288xf32>
    %34 = vector.extract_strided_slice %30 {offsets = [0, 18], sizes = [8, 288], strides = [1, 1]} : vector<8x326xf32> to vector<8x288xf32>
    %35 = vector.extract_strided_slice %30 {offsets = [0, 19], sizes = [8, 288], strides = [1, 1]} : vector<8x326xf32> to vector<8x288xf32>
    %36 = vector.extract_strided_slice %30 {offsets = [0, 20], sizes = [8, 288], strides = [1, 1]} : vector<8x326xf32> to vector<8x288xf32>
    %37 = vector.extract_strided_slice %30 {offsets = [0, 36], sizes = [8, 288], strides = [1, 1]} : vector<8x326xf32> to vector<8x288xf32>
    %38 = vector.extract_strided_slice %30 {offsets = [0, 37], sizes = [8, 288], strides = [1, 1]} : vector<8x326xf32> to vector<8x288xf32>
    %39 = vector.extract_strided_slice %30 {offsets = [0, 38], sizes = [8, 288], strides = [1, 1]} : vector<8x326xf32> to vector<8x288xf32>
    %40 = tpu.concatenate %31, %32, %33, %34, %35, %36, %37, %38, %39 in 0 : vector<8x288xf32>, vector<8x288xf32>, vector<8x288xf32>, vector<8x288xf32>, vector<8x288xf32>, vector<8x288xf32>, vector<8x288xf32>, vector<8x288xf32>, vector<8x288xf32> -> vector<72x288xf32>
    %41 = arith.truncf %40 : vector<72x288xf32> to vector<72x288xbf16>
    %c0_13 = arith.constant 0 : index
    %c0_14 = arith.constant 0 : index
    %42 = vector.load %arg3[%c0_13, %c0_14] : memref<8x72xbf16, #tpu.memory_space<vmem>>, vector<8x72xbf16>
    %cst_15 = arith.constant dense<0.000000e+00> : vector<8x288xf32>
    %43 = tpu.matmul %42, %41, %cst_15 {dimension_numbers = #tpu.dot_dimension_numbers<[1], [0], [0], [1], [0, 0, 1, 1], [], []>} : vector<8x72xbf16>, vector<72x288xbf16>, vector<8x288xf32> -> vector<8x288xf32>
    %c0_16 = arith.constant 0 : index
    %c0_17 = arith.constant 0 : index
    %44 = vector.load %arg7[%c0_16, %c0_17] : memref<8x1xf32, #tpu.memory_space<vmem>>, vector<8x1xf32>
    %45 = vector.broadcast %44 : vector<8x1xf32> to vector<8x288xf32>
    %46 = arith.addf %43, %45 : vector<8x288xf32>
    %c0_18 = arith.constant 0 : index
    %c0_19 = arith.constant 0 : index
    %47 = vector.load %arg4[%c0_18, %c0_19] : memref<8x8xbf16, #tpu.memory_space<vmem>>, vector<8x8xbf16>
    %cst_20 = arith.constant dense<0.000000e+00> : vector<8x288xf32>
    %48 = tpu.matmul %47, %1, %cst_20 {dimension_numbers = #tpu.dot_dimension_numbers<[1], [0], [0], [1], [0, 0, 1, 1], [], []>} : vector<8x8xbf16>, vector<8x288xbf16>, vector<8x288xf32> -> vector<8x288xf32>
    %c0_21 = arith.constant 0 : index
    %c0_22 = arith.constant 0 : index
    %49 = vector.load %arg8[%c0_21, %c0_22] : memref<8x1xf32, #tpu.memory_space<vmem>>, vector<8x1xf32>
    %50 = vector.broadcast %49 : vector<8x1xf32> to vector<8x288xf32>
    %51 = arith.addf %48, %50 : vector<8x288xf32>
    %52 = arith.addf %46, %51 : vector<8x288xf32>
    %c0_23 = arith.constant 0 : index
    %c0_24 = arith.constant 0 : index
    %c0_25 = arith.constant 0 : index
    %53 = vector.load %arg10[%c0_23, %c0_24, %c0_25] : memref<1x8x288xf32, #tpu.memory_space<vmem>>, vector<1x8x288xf32>
    %54 = vector.shape_cast %53 : vector<1x8x288xf32> to vector<8x288xf32>
    %55 = vector.shape_cast %52 : vector<8x288xf32> to vector<1x8x288xf32>
    tpu.vector_store %arg10[%c0_23, %c0_24, %c0_25], %55 {strides = array<i32>} : memref<1x8x288xf32, #tpu.memory_space<vmem>>, vector<1x8x288xf32>,
    return
  }
  func.func @transform_0(%arg0: i32) -> (i32, i32, i32) {
    %c0_i32 = arith.constant 0 : i32
    %c0_i32_0 = arith.constant 0 : i32
    %c0_i32_1 = arith.constant 0 : i32
    return %arg0, %c0_i32, %c0_i32_0 : i32, i32, i32
  }
  func.func @transform_1(%arg0: i32) -> (i32, i32) {
    %c0_i32 = arith.constant 0 : i32
    %c0_i32_0 = arith.constant 0 : i32
    %c0_i32_1 = arith.constant 0 : i32
    return %c0_i32, %c0_i32_0 : i32, i32
  }
  func.func @transform_2(%arg0: i32) -> (i32, i32) {
    %c0_i32 = arith.constant 0 : i32
    %c0_i32_0 = arith.constant 0 : i32
    %c0_i32_1 = arith.constant 0 : i32
    return %c0_i32, %c0_i32_0 : i32, i32
  }
  func.func @transform_3(%arg0: i32) -> (i32, i32) {
    %c0_i32 = arith.constant 0 : i32
    %c0_i32_0 = arith.constant 0 : i32
    %c0_i32_1 = arith.constant 0 : i32
    return %c0_i32, %c0_i32_0 : i32, i32
  }
  func.func @transform_4(%arg0: i32) -> (i32, i32) {
    %c0_i32 = arith.constant 0 : i32
    %c0_i32_0 = arith.constant 0 : i32
    %c0_i32_1 = arith.constant 0 : i32
    return %c0_i32, %c0_i32_0 : i32, i32
  }
  func.func @transform_5(%arg0: i32) -> (i32, i32) {
    %c0_i32 = arith.constant 0 : i32
    %c0_i32_0 = arith.constant 0 : i32
    %c0_i32_1 = arith.constant 0 : i32
    return %c0_i32, %c0_i32_0 : i32, i32
  }
  func.func @transform_6(%arg0: i32) -> (i32, i32) {
    %c0_i32 = arith.constant 0 : i32
    %c0_i32_0 = arith.constant 0 : i32
    %c0_i32_1 = arith.constant 0 : i32
    return %c0_i32, %c0_i32_0 : i32, i32
  }
  func.func @transform_7(%arg0: i32) -> (i32, i32) {
    %c0_i32 = arith.constant 0 : i32
    %c0_i32_0 = arith.constant 0 : i32
    %c0_i32_1 = arith.constant 0 : i32
    return %c0_i32, %c0_i32_0 : i32, i32
  }
  func.func @transform_8(%arg0: i32) -> (i32, i32) {
    %c0_i32 = arith.constant 0 : i32
    %c0_i32_0 = arith.constant 0 : i32
    %c0_i32_1 = arith.constant 0 : i32
    return %c0_i32, %c0_i32_0 : i32, i32
  }
  func.func @transform_9(%arg0: i32) -> (i32, i32, i32) {
    %c0_i32 = arith.constant 0 : i32
    %c0_i32_0 = arith.constant 0 : i32
    %c0_i32_1 = arith.constant 0 : i32
    return %arg0, %c0_i32, %c0_i32_0 : i32, i32, i32
  }
}

</mosaic_0001>

<bundles_post_ra>
// kernel: bottleneck_ir_pallas.1
= control target key start
LH: loop header
LB: loop body
LE: loop exit
PB: predicated region body
PF: predicated region fallthrough
CT: control target
= control target key end

     0   :  { %s1282_s30 = smov 0   ;;  %s1486_s0 = inlined_call_operand.vmem [shape: bf16[2,8,288], index: 0, kind: input, shape index: {}]   ;;  %s1487_s1 = inlined_call_operand.vmem [shape: bf16[8,72], index: 1, kind: input, shape index: {}]   ;;  %s1488_s2 = inlined_call_operand.vmem [shape: bf16[8,72], index: 2, kind: input, shape index: {}]   ;;  %s1489_s3 = inlined_call_operand.vmem [shape: bf16[8,8], index: 3, kind: input, shape index: {}]   ;;  %s1490_s4 = inlined_call_operand.vmem [shape: f32[8,288], index: 4, kind: input, shape index: {}]   ;;  %s1491_s5 = inlined_call_operand.vmem [shape: f32[8,1], index: 5, kind: input, shape index: {}]   ;;  %s1492_s6 = inlined_call_operand.vmem [shape: f32[8,1], index: 6, kind: input, shape index: {}]   ;;  %s1493_s7 = inlined_call_operand.vmem [shape: f32[8,1], index: 7, kind: input, shape index: {}]   ;;  %s1494_s8 = inlined_call_operand.vmem [shape: f32[1,288], index: 8, kind: input, shape index: {}]   ;;  %s1495_s9 = inlined_call_operand.vmem [shape: f32[2,8,288], index: 9, kind: output, shape index: {}]  }
   0x1 LB: > { %s996_s10 = sadd.s32 4294967295, %s1217_s30   ;;  %p1000_p0 = scmp.ge.s32.totalorder %s1217_s30, 1  ;;  %s1217_s30 = sphi %s1282_s30, %s19_s30  }
   0x2   : > { %p287_p1 = scmp.lt.s32.totalorder %s1217_s30, 3 }
   0x4   : > { %p288_p2 = pnand %p1000_p0, %p287_p1 }
   0x5   : > { %p323_p3 = scmp.lt.s32.totalorder (!%p288_p2), %s996_s10, 1  ;;  %s1219_s15 = smov (!%p288_p2), 19   ;;  %vm348_vm0 = vcmask (!%p288_p2), 154624   ;;  %vm355_vm1 = vcmask (!%p288_p2), 416768   ;;  %v1224_v12 = vmov (!%p288_p2), 0.0   ;;  %vm1496_vm2 = vmmov (!%p288_p2), 0  }
   0x6   : > { %291 = sbr.rel (%p288_p2) target bundleno = 1022 (0x3fe), region = 56  ;;  %s1220_s16 = smov (!%p288_p2), 126   ;;  %1045 = vmatprep.subr.bf16.mxu1 (!%p288_p2), %v1224_v12  ;;  %1055 = vmatprep.mubr.msk.bf16.mxu1 (!%p288_p2), %vm1496_vm2, %v1224_v12  ;;  %v1230_v17 = vmov (!%p288_p2), 0   ;;  %v572_v18 = vld [vmem:[%s1491_s5] sm:$0xff] (!%p288_p2)  ;;  %vm365_vm3 = vcmask (!%p288_p2), 1039360   ;;  %vm1003_vm4 = vmneg (!%p288_p2), %vm348_vm0  ;;  %vm1231_vm5 = vmmov (!%p288_p2), 1  }
   0x7   : > { %s1221_s17 = smov (!%p288_p2), 127   ;;  %s1222_s18 = smov (!%p288_p2), 109   ;;  %520 = vmatprep.mubr.bf16.mxu0 (!%p288_p2), %v1230_v17  ;;  %1161 = vset.pattern.permute.xlu0 (!%p288_p2), %v1230_v17  ;;  %vm1344_vm6 = vmpackc.low (!%p288_p2), %vm1231_vm5, %vm355_vm1  ;;  %vm377_vm7 = vcmask (!%p288_p2), 1031168   ;;  %vm389_vm9 = vcmask (!%p288_p2), 900096   ;;  %vm401_vm10 = vcmask (!%p288_p2), 891904   ;;  %vm413_vm11 = vcmask (!%p288_p2), 883712  }
   0x8   : > { %s1223_s19 = smov (!%p288_p2), 110   ;;  %s1225_s20 = smov (!%p288_p2), 92   ;;  %1207 = vset.pattern.permute.xlu1 (!%p288_p2), %v1230_v17  ;;  %vm1350_vm8 = vmpackc.low (!%p288_p2), %vm1231_vm5, %vm1003_vm4  ;;  %vm425_vm12 = vcmask (!%p288_p2), 752640   ;;  %vm449_vm13 = vcmask (!%p288_p2), 736256   ;;  %vm437_vm14 = vcmask (!%p288_p2), 744448   ;;  %vm478_vm15 = vcmask (!%p288_p2), 1043456  }
   0x9   : > { %s1226_s21 = smov (!%p288_p2), 108   ;;  %s1227_s22 = smov (!%p288_p2), 91   ;;  %vm1497_vm4 = vcmask (!%p288_p2), 588800  }
   0xa   : > { %s1228_s23 = smov (!%p288_p2), 90  }
   0xd   : > { %s1506_s10 = smov (!%p323_p3, %s996_s10), 1 }
   0xe   : > { %s1093_s11 = smul.u32 12, %s1506_s10 }
  0x10   : > { %s327_s14 = scalar_lea.vmem %s1486_s0, %s1093_s11 }
  0x11   : > { %v1296_v0 = vld [vmem:[%s327_s14] sm:$0xff]  ;;  %v1298_v1 = vld [vmem:[%s327_s14 + $0x8] sm:$0xf] }
  0x12   : > { %v337_v2 = vunpack.c.h.bf16 %v1296_v0  ;;  %v338_v3 = vunpack.c.l.bf16 %v1298_v1  ;;  %v336_v5 = vunpack.c.l.bf16 %v1296_v0 }
  0x14   : > { %v1116_v4 = vpack.i.bf16 %v338_v3, %v337_v2 }
  0x16   : > { %1117 = vrot.lane.b32.xlu0 %v1116_v4, %s1219_s15 }
  0x1a   : > { %342 = vrot.lane.b32.xlu0 %v336_v5, %s1219_s15 }
  0x88   : > { %v1118_v6 = vpop.permute.xlu0 %1117 }
  0x89   : > { %v1120_v9 = vunpack.i.h.bf16 %v1118_v6  ;;  %v1119_v10 = vunpack.i.l.bf16 %v1118_v6 }
  0x8b   : > { %v350_v11 = vsel %vm348_vm0, %v1119_v10, %v1120_v9 }
  0x8c   : > { %v1305_v7 = vpop.permute.xlu0 %342  ;;  %v356_v13 = vsel %vm355_vm1, %v350_v11, 0.0 }
  0x8d   : > { %v354_v8 = vsel %vm348_vm0, 0.0, %v1305_v7  ;;  %v349_v14 = vsel %vm348_vm0, %v1305_v7, %v1119_v10 }
  0x8e   : > { %371 = vrot.lane.b32.xlu0 %v354_v8, %s1220_s16  ;;  %359 = vrot.lane.b32.xlu1 %v354_v8, %s1221_s17  ;;  %v1126_v15 = vpack.i.bf16 %v356_v13, %v349_v14  ;;  %v1151_v16 = vpack.i.bf16 %v349_v14, %v354_v8 }
  0x92   : > { %395 = vrot.lane.b32.xlu0 %v354_v8, %s1222_s18  ;;  %383 = vrot.lane.b32.xlu1 %v354_v8, %s1223_s19 }
  0x96   : > { %419 = vrot.lane.b32.xlu0 %v354_v8, %s1225_s20  ;;  %407 = vrot.lane.b32.xlu1 %v354_v8, %s1226_s21 }
  0x9a   : > { %431 = vrot.lane.b32.xlu1 %v354_v8, %s1227_s22  ;;  %1127 = vrot.lane.b32.xlu0 %v1126_v15, %s1220_s16 }
  0x9e   : > { %1137 = vrot.lane.b32.xlu0 %v1126_v15, %s1222_s18  ;;  %1122 = vrot.lane.b32.xlu1 %v1126_v15, %s1221_s17 }
  0xa2   : > { %1147 = vrot.lane.b32.xlu0 %v1126_v15, %s1225_s20  ;;  %1132 = vrot.lane.b32.xlu1 %v1126_v15, %s1223_s19 }
  0xa6   : > { %1152 = vrot.lane.b32.xlu0 %v1151_v16, %s1228_s23  ;;  %1142 = vrot.lane.b32.xlu1 %v1126_v15, %s1226_s21 }
  0xaa   : > { %1157 = vrot.lane.b32.xlu1 %v1126_v15, %s1227_s22  ;;  %575 = vperm.xlu0 %1161, %v572_v18  }
  0xae   : > { %447 = vrot.lane.b32.xlu1 %v356_v13, %s1228_s23 }
 0x100   : > { %v372_v19 = vpop.permute.xlu0 %371  ;;  %v360_v20 = vpop.permute.xlu1 %359 }
 0x104   : > { %v396_v21 = vpop.permute.xlu0 %395  ;;  %v384_v22 = vpop.permute.xlu1 %383 }
 0x108   : > { %v1338_v23 = vpop.permute.xlu0 %419  ;;  %v408_v24 = vpop.permute.xlu1 %407 }
 0x10c   : > { %v1340_v25 = vpop.permute.xlu1 %431  ;;  %v1128_v26 = vpop.permute.xlu0 %1127 }
 0x10d   : > { %v1130_v31 = vunpack.i.h.bf16 %v1128_v26  ;;  %v1129_v32 = vunpack.i.l.bf16 %v1128_v26 }
 0x10f   : > { %v379_v46 = vsel %vm377_vm7, %v1129_v32, %v1130_v31  ;;  %v378_v49 = vsel %vm377_vm7, %v372_v19, %v1129_v32 }
 0x110   : > { %v1138_v27 = vpop.permute.xlu0 %1137  ;;  %v1123_v28 = vpop.permute.xlu1 %1122 }
 0x111   : > { %v1125_v29 = vunpack.i.h.bf16 %v1123_v28  ;;  %v1124_v30 = vunpack.i.l.bf16 %v1123_v28  ;;  %v1140_v42 = vunpack.i.h.bf16 %v1138_v27  ;;  %v1139_v43 = vunpack.i.l.bf16 %v1138_v27 }
 0x112   : > { %v586_v27 = vlaneseq }
 0x113   : > { %v1010_v34 = vpack.c.bf16 %v1125_v29, %v350_v11  ;;  %v367_v35 = vsel %vm365_vm3, %v1124_v30, %v1125_v29  ;;  %v366_v36 = vsel %vm365_vm3, %v360_v20, %v1124_v30  ;;  %v403_v57 = vsel %vm401_vm10, %v1139_v43, %v1140_v42  ;;  %v473_v29 = vld [vmem:[%s1490_s4 + $0x10] sm:$0xff] }
 0x114   : > { %v1148_v37 = vpop.permute.xlu0 %1147  ;;  %v1133_v38 = vpop.permute.xlu1 %1132  ;;  %v456_v39 = vpack.c.bf16 %v367_v35, %v349_v14  ;;  %v1005_v41 = vpack.c.bf16 %v366_v36, %v1305_v7  ;;  %v402_v61 = vsel %vm401_vm10, %v396_v21, %v1139_v43  ;;  %v587_v28 = vshrl.u32 %v586_v27, 7  ;;  %v471_v35 = vld [vmem:[%s1490_s4] sm:$0xff]  ;;  %v472_v36 = vld [vmem:[%s1490_s4 + $0x8] sm:$0xff] }
 0x115   : > { %v1135_v44 = vunpack.i.h.bf16 %v1133_v38  ;;  %v1134_v45 = vunpack.i.l.bf16 %v1133_v38  ;;  %1046 = vmatpush3.bf16.msk.msra.mxu1 %vm1344_vm6, %v1010_v34  ;;  %v1150_v58 = vunpack.i.h.bf16 %v1148_v37  ;;  %v1149_v59 = vunpack.i.l.bf16 %v1148_v37 }
 0x116   : > { %488 = vmatprep.subr.bf16.mxu0 %v456_v39  ;;  %1047 = vmatprep.subr.bf16.mxu1 %v1224_v12  ;;  %v592_v37 = vsub.s32 1, %v587_v28  ;;  %v596_v38 = vsub.s32 2, %v587_v28 }
 0x117   : > { %v460_v47 = vpack.c.bf16 %v1135_v44, %v1130_v31  ;;  %1006 = vmatpush1.bf16.msk.msra.mxu0 %vm1350_vm8, %v1005_v41  ;;  %v391_v48 = vsel %vm389_vm9, %v1134_v45, %v1135_v44  ;;  %v390_v50 = vsel %vm389_vm9, %v384_v22, %v1134_v45  ;;  %v427_v9 = vsel %vm425_vm12, %v1149_v59, %v1150_v58 }
 0x118   : > { %v1153_v51 = vpop.permute.xlu0 %1152  ;;  %v1143_v52 = vpop.permute.xlu1 %1142  ;;  %v459_v53 = vpack.c.bf16 %v391_v48, %v379_v46  ;;  %v458_v54 = vpack.c.bf16 %v390_v50, %v378_v49  ;;  %v426_v10 = vsel %vm425_vm12, %v1338_v23, %v1149_v59 }
 0x119   : > { %v1145_v55 = vunpack.i.h.bf16 %v1143_v52  ;;  %v1144_v56 = vunpack.i.l.bf16 %v1143_v52  ;;  %1048 = vmatpush3.bf16.msra.mxu1 %v460_v47  ;;  %v1155_v60 = vunpack.i.h.bf16 %v1153_v51  ;;  %v1154_v62 = vunpack.i.l.bf16 %v1153_v51 }
 0x11a   : > { %490 = vmatprep.subr.bf16.mxu0 %v459_v53  ;;  %1049 = vmatprep.subr.bf16.mxu1 %v1224_v12 }
 0x11b   : > { %v463_v63 = vpack.c.bf16 %v1145_v55, %v1140_v42  ;;  %491 = vmatpush1.bf16.msra.mxu0 %v458_v54  ;;  %v415_v2 = vsel %vm413_vm11, %v1144_v56, %v1145_v55  ;;  %v414_v3 = vsel %vm413_vm11, %v408_v24, %v1144_v56  ;;  %v450_v15 = vsel %vm449_vm13, %v1154_v62, %v1155_v60  ;;  %v584_v42 = vld [vmem:[%s1494_s8] sm:$0x7] }
 0x11c   : > { %v1158_v4 = vpop.permute.xlu1 %1157  ;;  %v462_v5 = vpack.c.bf16 %v415_v2, %v403_v57  ;;  %v461_v6 = vpack.c.bf16 %v414_v3, %v402_v61  ;;  %v467_v23 = vpack.c.bf16 %v450_v15, %v450_v15  ;;  %v593_v50 = vrot.slane %v584_v42, %v592_v37 }
 0x11d   : > { %v1160_v7 = vunpack.i.h.bf16 %v1158_v4  ;;  %v1159_v8 = vunpack.i.l.bf16 %v1158_v4  ;;  %1050 = vmatpush3.bf16.msra.mxu1 %v463_v63  ;;  %v597_v51 = vrot.slane %v584_v42, %v596_v38  ;;  %v588_v54 = vsub.s32 0, %v587_v28 }
 0x11e   : > { %492 = vmatprep.subr.bf16.mxu0 %v462_v5  ;;  %1051 = vmatprep.subr.bf16.mxu1 %v1224_v12  ;;  %v480_v26 = vsel %vm478_vm15, %v467_v23, 0 }
 0x11f   : > { %v466_v11 = vpack.c.bf16 %v1160_v7, %v1150_v58  ;;  %493 = vmatpush1.bf16.msra.mxu0 %v461_v6  ;;  %v439_v13 = vsel %vm437_vm14, %v1159_v8, %v1160_v7  ;;  %v438_v14 = vsel %vm437_vm14, %v1340_v25, %v1159_v8  ;;  %v470_v25 = vld [vmem:[%s1487_s1] sm:$0xf] }
 0x120   : > { %v448_v16 = vpop.permute.xlu1 %447  ;;  %v465_v18 = vpack.c.bf16 %v439_v13, %v427_v9  ;;  %v464_v19 = vpack.c.bf16 %v438_v14, %v426_v10  ;;  %v726_v13 = vld [vmem:[%s1492_s6] sm:$0xff] }
 0x121   : > { %v451_v20 = vsel %vm449_vm13, %v1155_v60, %v448_v16  ;;  %v469_v21 = vpack.c.bf16 %v448_v16, %v448_v16  ;;  %1052 = vmatpush3.bf16.msra.mxu1 %v466_v11  ;;  %v589_v60 = vrot.slane %v584_v42, %v588_v54  ;;  %v826_v11 = vld [vmem:[%s1493_s7] sm:$0xff] }
 0x122   : > { %v468_v22 = vpack.c.bf16 %v451_v20, %v451_v20  ;;  %494 = vmatprep.subr.bf16.mxu0 %v465_v18  ;;  %1053 = vmatprep.subr.bf16.mxu1 %v1224_v12 }
 0x123   : > { %495 = vmatpush1.bf16.msra.mxu0 %v464_v19  ;;  %v486_v24 = vsel %vm478_vm15, %v469_v21, 0 }
 0x124   : > { %1007 = vmatprep.subr.msk.bf16.mxu0 %vm478_vm15, %v468_v22 }
 0x125   : > { %1054 = vmatpush3.bf16.msra.mxu1 %v486_v24 }
 0x126   : > { %1059 = vmatprep.subr.bf16.mxu1 %v1224_v12 }
 0x127   : > { %497 = vmatpush1.bf16.msra.mxu0 %v480_v26 }
 0x128   : > { %1056 = vmatmul.mubr.msk.bf16.vlgmr.msra.gmra.mrb[0].mxu1 %vm1497_vm4, %v470_v25 }
 0x129   : > { %1069 = vmatprep.mubr.msk.bf16.mxu1 %vm1496_vm2, %v1224_v12  ;;  %v576_v31 = vpop.permute.xlu0 %575 }
 0x12a   : > { %1008 = vmatmul.mubr.msk.bf16.vlgmr.msra.gmra.mrb[0].mxu0 %vm1497_vm4, %v470_v25 }
 0x12b   : > { %776 = vmatprep.mubr.bf16.mxu0 %v1230_v17 }
 0x1fb   : > { %v563_v30 = vpop.f32.mrb[0].mxu1 }
 0x1fc   : > { %v564_v32 = vadd.f32 %v563_v30, %v473_v29  ;;  %v1057_v34 = vpop.f32.mrb[1].mxu1 }
 0x1fd   : > { %v522_v39 = vpop.f32.mrb[0].mxu0  ;;  %v566_v41 = vpop.f32.mrb[2].mxu1 }
 0x1fe   : > { %vm571_vm5 = vcmp.ge.f32.partialorder %v564_v32, 0.0  ;;  %v580_v43 = vmul.f32 %v576_v31, %v564_v32  ;;  %v524_v44 = vpop.f32.mrb[1].mxu0  ;;  %v1058_v45 = vpop.f32.mrb[3].mxu1  ;;  %v523_v46 = vadd.f32 %v522_v39, %v471_v35 }
 0x1ff   : > { %v525_v47 = vadd.f32 %v524_v44, %v472_v36  ;;  %v526_v48 = vpop.f32.mrb[2].mxu0 }
 0x200   : > { %v527_v49 = vpop.f32.mrb[3].mxu0  ;;  %v583_v53 = vsel %vm571_vm5, %v564_v32, %v580_v43  ;;  %v578_v55 = vmul.f32 %v576_v31, %v523_v46  ;;  %vm569_vm4 = vcmp.ge.f32.partialorder %v523_v46, 0.0 }
 0x201   : > { %vm570_vm2 = vcmp.ge.f32.partialorder %v525_v47, 0.0  ;;  %v579_v52 = vmul.f32 %v576_v31, %v525_v47  ;;  %v603_v58 = vmul.f32 %v597_v51, %v583_v53 }
 0x202   : > { %v581_v61 = vsel %vm569_vm4, %v523_v46, %v578_v55 }
 0x203   : > { %v582_v56 = vsel %vm570_vm2, %v525_v47, %v579_v52  ;;  %v601_v62 = vmul.f32 %v589_v60, %v581_v61 }
 0x204   : > { %v602_v57 = vmul.f32 %v593_v50, %v582_v56 }
 0x206   : > { %v1162_v59 = vpack.i.bf16 %v603_v58, %v602_v57 }
 0x208   : > { %1163 = vrot.lane.b32.xlu1 %v1162_v59, %s1219_s15 }
 0x20c   : > { %607 = vrot.lane.b32.xlu1 %v601_v62, %s1219_s15 }
 0x27a   : > { %v1164_v63 = vpop.permute.xlu1 %1163 }
 0x27b   : > { %v1166_v4 = vunpack.i.h.bf16 %v1164_v63  ;;  %v1165_v5 = vunpack.i.l.bf16 %v1164_v63 }
 0x27d   : > { %v614_v6 = vsel %vm348_vm0, %v1165_v5, %v1166_v4 }
 0x27e   : > { %v608_v2 = vpop.permute.xlu1 %607  ;;  %v619_v7 = vsel %vm355_vm1, %v614_v6, 0.0  ;;  %vm1503_vm1 = vmmov 0  }
 0x27f   : > { %v618_v3 = vsel %vm348_vm0, 0.0, %v608_v2  ;;  %v613_v8 = vsel %vm348_vm0, %v608_v2, %v1165_v5  ;;  %vm1502_vm0 = vcmask 588800  }
 0x280   : > { %633 = vrot.lane.b32.xlu0 %v618_v3, %s1220_s16  ;;  %622 = vrot.lane.b32.xlu1 %v618_v3, %s1221_s17  ;;  %v1167_v9 = vpack.i.bf16 %v619_v7, %v613_v8  ;;  %v1197_v10 = vpack.i.bf16 %v613_v8, %v618_v3  ;;  %vm1504_vm2 = vmmov %vm1502_vm0 }
 0x284   : > { %655 = vrot.lane.b32.xlu0 %v618_v3, %s1222_s18  ;;  %644 = vrot.lane.b32.xlu1 %v618_v3, %s1223_s19 }
 0x288   : > { %677 = vrot.lane.b32.xlu0 %v618_v3, %s1225_s20  ;;  %666 = vrot.lane.b32.xlu1 %v618_v3, %s1226_s21 }
 0x28c   : > { %688 = vrot.lane.b32.xlu1 %v618_v3, %s1227_s22  ;;  %1168 = vrot.lane.b32.xlu0 %v1167_v9, %s1221_s17 }
 0x290   : > { %1178 = vrot.lane.b32.xlu1 %v1167_v9, %s1223_s19  ;;  %1173 = vrot.lane.b32.xlu0 %v1167_v9, %s1220_s16 }
 0x294   : > { %1188 = vrot.lane.b32.xlu1 %v1167_v9, %s1226_s21  ;;  %1183 = vrot.lane.b32.xlu0 %v1167_v9, %s1222_s18 }
 0x298   : > { %1203 = vrot.lane.b32.xlu1 %v1167_v9, %s1227_s22  ;;  %1193 = vrot.lane.b32.xlu0 %v1167_v9, %s1225_s20  ;;  %s1094_s22 = smul.u32 24, %s1506_s10 }
 0x29a   : > { %s332_s28 = scalar_lea.vmem %s1495_s9, %s1094_s22 }
 0x29c   : > { %703 = vrot.lane.b32.xlu1 %v619_v7, %s1228_s23  ;;  %1198 = vrot.lane.b32.xlu0 %v1197_v10, %s1228_s23 }
 0x2a0   : > { %829 = vperm.xlu1 %1207, %v826_v11   ;;  %729 = vperm.xlu0 %1161, %v726_v13   ;;  %v1025_v13 = vcombine.low %v1298_v1, %v1298_v1  ;;  %v1024_v1 = vcombine.high %v1296_v0, %v1296_v0 }
 0x2f2   : > { %v634_v14 = vpop.permute.xlu0 %633  ;;  %v623_v15 = vpop.permute.xlu1 %622 }
 0x2f6   : > { %v656_v16 = vpop.permute.xlu0 %655  ;;  %v645_v18 = vpop.permute.xlu1 %644 }
 0x2fa   : > { %v678_v19 = vpop.permute.xlu0 %677  ;;  %v667_v20 = vpop.permute.xlu1 %666 }
 0x2fe   : > { %v689_v21 = vpop.permute.xlu1 %688  ;;  %v1169_v22 = vpop.permute.xlu0 %1168 }
 0x2ff   : > { %v1171_v23 = vunpack.i.h.bf16 %v1169_v22  ;;  %v1170_v24 = vunpack.i.l.bf16 %v1169_v22  ;;  %v1023_v22 = vcombine.low %v1296_v0, %v1296_v0  ;;  %v825_v0 = vld [vmem:[%s1489_s3] sm:$0xf] }
 0x301   : > { %v1020_v25 = vpack.c.bf16 %v1171_v23, %v614_v6  ;;  %v628_v26 = vsel %vm365_vm3, %v623_v15, %v1170_v24  ;;  %v629_v27 = vsel %vm365_vm3, %v1170_v24, %v1171_v23  ;;  %v851_v23 = vsel %vm478_vm15, %v1025_v13, 0 }
 0x302   : > { %v1015_v28 = vpack.c.bf16 %v628_v26, %v608_v2  ;;  %v1179_v29 = vpop.permute.xlu1 %1178  ;;  %v1174_v30 = vpop.permute.xlu0 %1173  ;;  %v711_v31 = vpack.c.bf16 %v629_v27, %v613_v8  ;;  %v845_v24 = vsel %vm478_vm15, %v1023_v22, 0  ;;  %vm840_vm3 = vcmask 64512  }
 0x303   : > { %v1181_v32 = vunpack.i.h.bf16 %v1179_v29  ;;  %v1180_v34 = vunpack.i.l.bf16 %v1179_v29  ;;  %v1176_v35 = vunpack.i.h.bf16 %v1174_v30  ;;  %v1175_v36 = vunpack.i.l.bf16 %v1174_v30  ;;  %1060 = vmatpush3.bf16.msk.msra.mxu1 %vm1344_vm6, %v1020_v25 }
 0x304   : > { %744 = vmatprep.subr.bf16.mxu0 %v711_v31  ;;  %1061 = vmatprep.subr.bf16.mxu1 %v1224_v12  ;;  %vm939_vm6 = vcmask 261120  }
 0x305   : > { %v650_v37 = vsel %vm389_vm9, %v645_v18, %v1180_v34  ;;  %v715_v38 = vpack.c.bf16 %v1181_v32, %v1176_v35  ;;  %v639_v39 = vsel %vm377_vm7, %v634_v14, %v1175_v36  ;;  %1016 = vmatpush1.bf16.msk.msra.mxu0 %vm1350_vm8, %v1015_v28  ;;  %v640_v41 = vsel %vm377_vm7, %v1175_v36, %v1176_v35 }
 0x306   : > { %v713_v42 = vpack.c.bf16 %v650_v37, %v639_v39  ;;  %v1189_v43 = vpop.permute.xlu1 %1188  ;;  %v1184_v44 = vpop.permute.xlu0 %1183  ;;  %v651_v45 = vsel %vm389_vm9, %v1180_v34, %v1181_v32 }
 0x307   : > { %v1191_v33 = vunpack.i.h.bf16 %v1189_v43  ;;  %v1190_v46 = vunpack.i.l.bf16 %v1189_v43  ;;  %v1186_v47 = vunpack.i.h.bf16 %v1184_v44  ;;  %v1185_v48 = vunpack.i.l.bf16 %v1184_v44  ;;  %1062 = vmatpush3.bf16.msra.mxu1 %v715_v38 }
 0x308   : > { %v714_v49 = vpack.c.bf16 %v651_v45, %v640_v41  ;;  %1063 = vmatprep.subr.bf16.mxu1 %v1224_v12 }
 0x309   : > { %v672_v50 = vsel %vm413_vm11, %v667_v20, %v1190_v46  ;;  %v718_v51 = vpack.c.bf16 %v1191_v33, %v1186_v47  ;;  %v661_v40 = vsel %vm401_vm10, %v656_v16, %v1185_v48  ;;  %v662_v52 = vsel %vm401_vm10, %v1185_v48, %v1186_v47  ;;  %v725_v20 = vld [vmem:[%s1488_s2] sm:$0xf] }
 0x30a   : > { %v716_v53 = vpack.c.bf16 %v672_v50, %v661_v40  ;;  %746 = vmatprep.subr.bf16.mxu0 %v714_v49  ;;  %v1204_v54 = vpop.permute.xlu1 %1203  ;;  %v1194_v55 = vpop.permute.xlu0 %1193  ;;  %v673_v56 = vsel %vm413_vm11, %v1190_v46, %v1191_v33 }
 0x30b   : > { %747 = vmatpush1.bf16.msra.mxu0 %v713_v42  ;;  %v1206_v57 = vunpack.i.h.bf16 %v1204_v54  ;;  %v1205_v58 = vunpack.i.l.bf16 %v1204_v54  ;;  %v1196_v59 = vunpack.i.h.bf16 %v1194_v55  ;;  %v1195_v60 = vunpack.i.l.bf16 %v1194_v55  ;;  %1064 = vmatpush3.bf16.msra.mxu1 %v718_v51 }
 0x30c   : > { %v717_v61 = vpack.c.bf16 %v673_v56, %v662_v52  ;;  %1065 = vmatprep.subr.bf16.mxu1 %v1224_v12 }
 0x30d   : > { %v694_v62 = vsel %vm437_vm14, %v689_v21, %v1205_v58  ;;  %v721_v63 = vpack.c.bf16 %v1206_v57, %v1196_v59  ;;  %v683_v2 = vsel %vm425_vm12, %v678_v19, %v1195_v60  ;;  %v684_v3 = vsel %vm425_vm12, %v1195_v60, %v1196_v59 }
 0x30e   : > { %v719_v4 = vpack.c.bf16 %v694_v62, %v683_v2  ;;  %748 = vmatprep.subr.bf16.mxu0 %v717_v61  ;;  %v704_v5 = vpop.permute.xlu1 %703  ;;  %v1199_v6 = vpop.permute.xlu0 %1198  ;;  %v695_v7 = vsel %vm437_vm14, %v1205_v58, %v1206_v57 }
 0x30f   : > { %749 = vmatpush1.bf16.msra.mxu0 %v716_v53  ;;  %v724_v8 = vpack.c.bf16 %v704_v5, %v704_v5  ;;  %v1201_v9 = vunpack.i.h.bf16 %v1199_v6  ;;  %v1200_v10 = vunpack.i.l.bf16 %v1199_v6  ;;  %1066 = vmatpush3.bf16.msra.mxu1 %v721_v63  ;;  %v720_v11 = vpack.c.bf16 %v695_v7, %v684_v3 }
 0x310   : > { %1067 = vmatprep.subr.bf16.mxu1 %v1224_v12 }
 0x311   : > { %v706_v14 = vsel %vm449_vm13, %v1201_v9, %v704_v5  ;;  %750 = vmatprep.subr.bf16.mxu0 %v720_v11  ;;  %v742_v15 = vsel %vm478_vm15, %v724_v8, 0  ;;  %v705_v16 = vsel %vm449_vm13, %v1200_v10, %v1201_v9 }
 0x312   : > { %v723_v18 = vpack.c.bf16 %v706_v14, %v706_v14  ;;  %v722_v19 = vpack.c.bf16 %v705_v16, %v705_v16 }
 0x313   : > { %751 = vmatpush1.bf16.msra.mxu0 %v719_v4  ;;  %1068 = vmatpush3.bf16.msra.mxu1 %v742_v15 }
 0x314   : > { %1017 = vmatprep.subr.msk.bf16.mxu0 %vm478_vm15, %v723_v18  ;;  %v736_v21 = vsel %vm478_vm15, %v722_v19, 0  ;;  %1073 = vmatprep.subr.bf16.mxu1 %v1224_v12 }
 0x316   : > { %1070 = vmatmul.mubr.msk.bf16.vlgmr.msra.gmra.mrb[4].mxu1 %vm1502_vm0, %v725_v20 }
 0x317   : > { %753 = vmatpush1.bf16.msra.mxu0 %v736_v21  ;;  %1074 = vmatpush3.bf16.msra.mxu1 %v851_v23 }
 0x318   : > { %1026 = vmatprep.subr.msk.bf16.mxu0 %vm478_vm15, %v1024_v1  ;;  %1075 = vmatprep.mubr.msk.bf16.mxu1 %vm1503_vm1, %v1224_v12 }
 0x31a   : > { %1018 = vmatmul.mubr.msk.bf16.vlgmr.msra.gmra.mrb[4].mxu0 %vm1504_vm2, %v725_v20 }
 0x31b   : > { %854 = vmatpush1.bf16.msra.mxu0 %v845_v24  ;;  %885 = vmatprep.mubr.bf16.mxu0 %v1230_v17 }
 0x31f   : > { %v830_v25 = vpop.permute.xlu1 %829  ;;  %v730_v26 = vpop.permute.xlu0 %729 }
 0x320   : > { %v1079_v27 = vadd.f32 %v830_v25, %v730_v26 }
 0x322   : > { %1076 = vmatmul.mubr.msk.bf16.vlgmr.msra.gmra.mrb[4].mxu1 %vm840_vm3, %v825_v0 }
 0x326   : > { %1027 = vmatmul.mubr.msk.bf16.vlgmr.msra.gmra.mrb[4].mxu0 %vm840_vm3, %v825_v0 }
 0x3f5   : > { %v928_v28 = vpop.f32.mrb[4].mxu1 }
 0x3f6   : > { %v1084_v12 = vadd.f32 %v1079_v27, %v928_v28  ;;  %v1077_v29 = vpop.f32.mrb[5].mxu1 }
 0x3f7   : > { %v931_v17 = vpop.f32.mrb[6].mxu1 }
 0x3f8   : > { %940 = vst.msk [vmem:[%s332_s28 + $0x10] sm:$0xff] %vm939_vm6, %v1084_v12  ;;  %v1078_v30 = vpop.f32.mrb[7].mxu1 }
 0x3f9   : > { %v887_v31 = vpop.f32.mrb[4].mxu0 }
 0x3fa   : > { %v1080_v32 = vadd.f32 %v1079_v27, %v887_v31  ;;  %v889_v34 = vpop.f32.mrb[5].mxu0 }
 0x3fb   : > { %v1082_v35 = vadd.f32 %v1079_v27, %v889_v34  ;;  %v891_v36 = vpop.f32.mrb[6].mxu0 }
 0x3fc   : > { %937 = vst [vmem:[%s332_s28] sm:$0xff] %v1080_v32  ;;  %v892_v37 = vpop.f32.mrb[7].mxu0 }
 0x3fd   : > { %938 = vst [vmem:[%s332_s28 + $0x8] sm:$0xff] %v1082_v35 }
 0x3fe PF: > { %s19_s30 = sadd.s32 1, %s1217_s30  }
 0x3ff   : > { %p16_p4 = scmp.ge.s32.totalorder %s19_s30, 4  }
 0x401   :  { %18 = sbr.rel (!%p16_p4) target bundleno = 1 (0x1), region = 86 }

</bundles_post_ra>
